<compile_context>
chip_gen: v7x
topology: tpu7x:2x2x1
jax: 0.10.0
libtpu: 0.0.40
codegen_flags: <defaults>
</compile_context>

<pallas_src>
import functools

import numpy as np
import jax
import jax.numpy as jnp
from jax import lax
from jax.experimental import pallas as pl
from jax.experimental.pallas import tpu as pltpu


def _mhsa_kernel(xt_ref, xqt_ref, mask_ref,
                 wqt_ref, bqt_ref, wkvt_ref, bkvt_ref, wot_ref, bot_ref,
                 ctxt_ref, attn_ref, *,
                 num_heads, key_dim, value_dim, compute_dtype, approx_reciprocal):
    H, dk, dv = num_heads, key_dim, value_dim
    A = H * dk
    cd = compute_dtype

    L = xt_ref.shape[2]          # full (key) sequence length
    Tq = xqt_ref.shape[2]        # query tile length

    # Activations are cast to the MXU compute dtype exactly once each.
    xt = xt_ref[0].astype(cd)    # (D, L)   source of keys / values
    xqt = xqt_ref[0].astype(cd)  # (D, Tq)  source of queries (this tile)

    # ---- fused, lane-dense projections (heads fused into the matmul output dim).
    # kv^T = Wkv^T @ x^T : single 2-D matmul, K = D, output (A+V, L).
    kvt = jnp.dot(wkvt_ref[...], xt, preferred_element_type=jnp.float32) + bkvt_ref[...]
    # q^T = (Wq / temperature)^T @ x_q^T : (A, Tq); 1/temperature already folded in.
    qt = jnp.dot(wqt_ref[...], xqt, preferred_element_type=jnp.float32) + bqt_ref[...]

    # Head split = leading-dim (sublane) reshape of the transposed projections.
    kt_h = kvt[:A].reshape(H, dk, L).astype(cd)                      # (H, dk, L)
    vt_h = kvt[A:].reshape(H, dv, L).astype(cd)                      # (H, dv, L)
    q_h = jnp.swapaxes(qt.reshape(H, dk, Tq), 1, 2).astype(cd)       # (H, Tq, dk)

    # ---- scores: leading-batch 3-D dot, K consumed already transposed (no .T).
    scores = lax.dot_general(q_h, kt_h, (((2,), (1,)), ((0,), (0,))),
                             preferred_element_type=jnp.float32)     # (H, Tq, L) f32

    # ---- causal + padding mask (single boolean, single where, f32 logits).
    q0 = pl.program_id(1) * Tq
    row = q0 + lax.broadcasted_iota(jnp.int32, (Tq, L), 0)
    col = lax.broadcasted_iota(jnp.int32, (Tq, L), 1)
    keep = jnp.logical_and(col <= row, mask_ref[0] > 0.0)            # (Tq, L) bool
    scores = jnp.where(keep, scores, jnp.float32(-1e9))

    # ---- softmax in f32; the divide goes to the EUP via the reciprocal.
    m = jnp.max(scores, axis=-1, keepdims=True)
    e = jnp.exp(scores - m)
    s = jnp.sum(e, axis=-1, keepdims=True)
    attn = e * pl.reciprocal(s, approx=approx_reciprocal)            # (H, Tq, L) f32
    # TODO(synk): attention dropout (p=0.1) omitted -- kernel implements the eval-mode forward.
    attn_ref[0] = attn.astype(attn_ref.dtype)                        # head-major, key-last slab

    # ---- attention * values, transposed: ctx^T[h] = v^T[h] (dv,L) . attn[h]^T  -> (H, dv, Tq)
    ctxt_h = lax.dot_general(vt_h, attn.astype(cd), (((2,), (2,)), ((0,), (0,))),
                             preferred_element_type=jnp.float32)

    # ---- output projection with the head reduction fused into the contraction (K = H*dv).
    ctxt = ctxt_h.reshape(H * dv, Tq).astype(cd)                     # leading-merge reshape
    outt = jnp.dot(wot_ref[...], ctxt, preferred_element_type=jnp.float32) + bot_ref[...]
    ctxt_ref[0] = outt.astype(ctxt_ref.dtype)                        # (Dout, Tq), lane dim = Tq


def masked_mhsa(x, mask, params, *, num_heads, key_dim, value_dim, temperature,
                q_tile=None, compute_dtype=jnp.bfloat16, attn_dtype=jnp.bfloat16,
                approx_reciprocal=True, vmem_limit_bytes=None):
    """Pallas forward of MaskedMultiHeadSelfAttention (eval mode).

    Returns (context (B, L, output_dim), attention (B, L, num_heads, L)),
    matching the PyTorch module's forward contract.

    q_tile: optional query tile (must equal L or be a multiple of 128 dividing L);
            bounds per-step VMEM for long sequences (keeps v7x's 64 MiB happy) and
            keeps >= 2 parallel grid steps for v7x's two TensorCores.
    """
    B, L, D = x.shape
    H = num_heads
    A = H * key_dim
    V = H * value_dim
    Dout = params["wo"].shape[1]

    Tq = L if q_tile is None else int(q_tile)
    Tq = min(Tq, L)
    assert L % Tq == 0, "q_tile must divide L"
    assert Tq == L or Tq % 128 == 0, "q_tile must equal L or be a multiple of 128"

    f32 = jnp.float32
    cd = compute_dtype
    inv_temp = jnp.asarray(1.0 / temperature, f32)

    # ---- wrapper-side layout plumbing (outside the kernel): transposed, 2-D, lane-dense.
    xt = jnp.transpose(x, (0, 2, 1))                                  # (B, D, L)
    mask3 = mask.astype(f32)[:, None, :]                              # (B, 1, L)
    wqt = (params["wq"].astype(f32) * inv_temp).T.astype(cd)          # (A, D), 1/temp folded
    bqt = (params["bq"].astype(f32) * inv_temp).reshape(A, 1)         # (A, 1) f32
    wkvt = params["wkv"].astype(f32).T.astype(cd)                     # (A+V, D)
    bkvt = params["bkv"].astype(f32).reshape(A + V, 1)                # (A+V, 1) f32
    wot = params["wo"].astype(f32).T.astype(cd)                       # (Dout, H*dv)
    bot = params["bo"].astype(f32).reshape(Dout, 1)                   # (Dout, 1) f32

    kernel = functools.partial(
        _mhsa_kernel, num_heads=H, key_dim=key_dim, value_dim=value_dim,
        compute_dtype=cd, approx_reciprocal=approx_reciprocal)

    out_shapes = (
        jax.ShapeDtypeStruct((B, Dout, L), x.dtype),                  # context, transposed
        jax.ShapeDtypeStruct((B, H, L, L), attn_dtype),               # attention, head-major
    )

    # NOTE: weights/biases are grid-invariant; single-buffering them
    # (pipeline_mode=pl.Buffered(1)) would halve their VMEM footprint.
    # TODO(synk): enable pl.Buffered(1) on the weight BlockSpecs once verified on the target jax build.
    grid_spec = pltpu.PrefetchScalarGridSpec(
        num_scalar_prefetch=0,
        grid=(B, L // Tq),
        in_specs=[
            pl.BlockSpec((1, D, L), lambda b, q: (b, 0, 0)),          # x^T (keys/values source)
            pl.BlockSpec((1, D, Tq), lambda b, q: (b, 0, q)),         # x^T query tile
            pl.BlockSpec((1, 1, L), lambda b, q: (b, 0, 0)),          # padding mask
            pl.BlockSpec((A, D), lambda b, q: (0, 0)),                # Wq^T (pre-scaled)
            pl.BlockSpec((A, 1), lambda b, q: (0, 0)),                # bq^T
            pl.BlockSpec((A + V, D), lambda b, q: (0, 0)),            # Wkv^T
            pl.BlockSpec((A + V, 1), lambda b, q: (0, 0)),            # bkv^T
            pl.BlockSpec((Dout, V), lambda b, q: (0, 0)),             # Wo^T
            pl.BlockSpec((Dout, 1), lambda b, q: (0, 0)),             # bo^T
        ],
        out_specs=[
            pl.BlockSpec((1, Dout, Tq), lambda b, q: (b, 0, q)),      # context^T
            pl.BlockSpec((1, H, Tq, L), lambda b, q: (b, 0, q, 0)),   # attention (key-last)
        ],
    )

    cp = dict(dimension_semantics=("parallel", "parallel"))
    if vmem_limit_bytes is not None:
        cp["vmem_limit_bytes"] = int(vmem_limit_bytes)

    ctxt, attn_hm = pl.pallas_call(
        kernel,
        out_shape=out_shapes,
        grid_spec=grid_spec,
        compiler_params=pltpu.CompilerParams(**cp),
    )(xt, xt, mask3, wqt, bqt, wkvt, bkvt, wot, bot)

    # Module contract: context (B, L, Dout), attention (B, L, H, L).  Both come out of
    # the kernel in lane-dense layouts; these transposes are wrapper-side plumbing.
    ctx = jnp.transpose(ctxt, (0, 2, 1))
    attn = jnp.transpose(attn_hm, (0, 2, 1, 3))
    return ctx, attn


def reference_mhsa(x, mask, params, *, num_heads, key_dim, value_dim, temperature):
    """Pure-JAX reference mirroring the PyTorch forward (eval mode, no dropout)."""
    B, L, D = x.shape
    A = num_heads * key_dim
    q = x @ params["wq"] + params["bq"]
    kv = x @ params["wkv"] + params["bkv"]
    k, v = kv[..., :A], kv[..., A:]

    q = q.reshape(B, L, num_heads, key_dim).transpose(0, 2, 1, 3)     # (B,H,L,dk)
    k = k.reshape(B, L, num_heads, key_dim).transpose(0, 2, 3, 1)     # (B,H,dk,L)
    v = v.reshape(B, L, num_heads, value_dim).transpose(0, 2, 1, 3)   # (B,H,L,dv)

    scores = jnp.matmul(q, k) / temperature                           # (B,H,L,L)
    causal = jnp.tril(jnp.ones((L, L), jnp.float32))
    full_mask = causal[None, None] * mask[:, None, None, :]
    scores = jnp.where(full_mask > 0, scores, -1e9)
    attn = jax.nn.softmax(scores, axis=-1)

    ctx = jnp.matmul(attn, v)                                         # (B,H,L,dv)
    ctx = ctx.transpose(0, 2, 1, 3).reshape(B, L, num_heads * value_dim)
    out = ctx @ params["wo"] + params["bo"]
    return out, attn.transpose(0, 2, 1, 3)                            # (B,L,H,L)


def _as_f32(a):
    return np.asarray(jnp.asarray(a, jnp.float32))


if __name__ == "__main__":
    # Module hyper-parameters (small, consistent with the PyTorch module).
    B, L = 2, 16
    input_dim = 32
    num_heads = 4
    total_attention_dim = 32
    total_value_dim = 32
    key_dim = total_attention_dim // num_heads
    value_dim = total_value_dim // num_heads
    output_dim = input_dim
    temperature = float(key_dim) ** 0.5

    key = jax.random.PRNGKey(0)
    kx, kq, kbq, kkv, kbkv, ko, kbo, kx2 = jax.random.split(key, 8)
    x = jax.random.normal(kx, (B, L, input_dim), jnp.float32)
    params = {
        "wq": 0.1 * jax.random.normal(kq, (input_dim, total_attention_dim), jnp.float32),
        "bq": 0.1 * jax.random.normal(kbq, (1, total_attention_dim), jnp.float32),
        "wkv": 0.1 * jax.random.normal(kkv, (input_dim, total_attention_dim + total_value_dim), jnp.float32),
        "bkv": 0.1 * jax.random.normal(kbkv, (1, total_attention_dim + total_value_dim), jnp.float32),
        "wo": 0.1 * jax.random.normal(ko, (total_value_dim, output_dim), jnp.float32),
        "bo": 0.1 * jax.random.normal(kbo, (1, output_dim), jnp.float32),
    }
    # Padding mask: second sequence has its last 3 tokens padded out.
    mask = jnp.ones((B, L), jnp.float32).at[1, -3:].set(0.0)

    hp = dict(num_heads=num_heads, key_dim=key_dim, value_dim=value_dim,
              temperature=temperature)
    ctx_ref, attn_ref = reference_mhsa(x, mask, params, **hp)

    # 1) f32 compute / f32 attention, exact softmax denominator (strict check).
    ctx1, attn1 = masked_mhsa(x, mask, params, compute_dtype=jnp.float32,
                              attn_dtype=jnp.float32, approx_reciprocal=False, **hp)
    jax.block_until_ready((ctx1, attn1))
    np.testing.assert_allclose(_as_f32(ctx1), _as_f32(ctx_ref), rtol=5e-3, atol=5e-3)
    np.testing.assert_allclose(_as_f32(attn1), _as_f32(attn_ref), rtol=5e-3, atol=5e-3)

    # 2) defaults: bf16 MXU operands (f32 accumulation, f32 softmax) and bf16 attention
    #    writeback (looser tolerance).
    ctx2, attn2 = masked_mhsa(x, mask, params, **hp)
    jax.block_until_ready((ctx2, attn2))
    np.testing.assert_allclose(_as_f32(ctx2), _as_f32(ctx_ref), rtol=5e-2, atol=5e-2)
    np.testing.assert_allclose(_as_f32(attn2), _as_f32(attn_ref), rtol=5e-2, atol=5e-2)

    # 3) longer sequence with query tiling (grid = (B, L/Tq) = (2, 2), both parallel).
    L2 = 256
    x2 = jax.random.normal(kx2, (B, L2, input_dim), jnp.float32)
    mask2 = jnp.ones((B, L2), jnp.float32).at[1, -5:].set(0.0)
    ctx_ref2, attn_ref2 = reference_mhsa(x2, mask2, params, **hp)
    ctx3, attn3 = masked_mhsa(x2, mask2, params, q_tile=128, **hp)
    jax.block_until_ready((ctx3, attn3))
    np.testing.assert_allclose(_as_f32(ctx3), _as_f32(ctx_ref2), rtol=5e-2, atol=5e-2)
    np.testing.assert_allclose(_as_f32(attn3), _as_f32(attn_ref2), rtol=5e-2, atol=5e-2)

    print("KERNEL_OK")
</pallas_src>

<mosaic_0001>
module attributes {stable_mosaic.version = 11 : i64} {
  func.func @_mhsa_kernel(%arg0: i32, %arg1: i32, %arg2: memref<1x32x16xf32, #tpu.memory_space<vmem>>, %arg3: memref<1x32x16xf32, #tpu.memory_space<vmem>>, %arg4: memref<1x1x16xf32, #tpu.memory_space<vmem>>, %arg5: memref<32x32xf32, #tpu.memory_space<vmem>>, %arg6: memref<32x1xf32, #tpu.memory_space<vmem>>, %arg7: memref<64x32xf32, #tpu.memory_space<vmem>>, %arg8: memref<64x1xf32, #tpu.memory_space<vmem>>, %arg9: memref<32x32xf32, #tpu.memory_space<vmem>>, %arg10: memref<32x1xf32, #tpu.memory_space<vmem>>, %arg11: memref<1x32x16xf32, #tpu.memory_space<vmem>>, %arg12: memref<1x4x16x16xf32, #tpu.memory_space<vmem>>) attributes {dimension_semantics = [#tpu.dimension_semantics<parallel>, #tpu.dimension_semantics<parallel>], iteration_bounds = array<i64: 2, 1>, scalar_prefetch = 0 : i64, scratch_operands = 0 : i64, tpu.core_type = #tpu.core_type<tc>, window_params = [{transform_indices = @transform_0, window_bounds = array<i64: 1, 32, 16>}, {transform_indices = @transform_1, window_bounds = array<i64: 1, 32, 16>}, {transform_indices = @transform_2, window_bounds = array<i64: 1, 1, 16>}, {pipeline_mode = #tpu.pipeline_mode<synchronous>, transform_indices = @transform_3, window_bounds = array<i64: 32, 32>}, {pipeline_mode = #tpu.pipeline_mode<synchronous>, transform_indices = @transform_4, window_bounds = array<i64: 32, 1>}, {pipeline_mode = #tpu.pipeline_mode<synchronous>, transform_indices = @transform_5, window_bounds = array<i64: 64, 32>}, {pipeline_mode = #tpu.pipeline_mode<synchronous>, transform_indices = @transform_6, window_bounds = array<i64: 64, 1>}, {pipeline_mode = #tpu.pipeline_mode<synchronous>, transform_indices = @transform_7, window_bounds = array<i64: 32, 32>}, {pipeline_mode = #tpu.pipeline_mode<synchronous>, transform_indices = @transform_8, window_bounds = array<i64: 32, 1>}, {transform_indices = @transform_9, window_bounds = array<i64: 1, 32, 16>}, {transform_indices = @transform_10, window_bounds = array<i64: 1, 4, 16, 16>}]} {
    %c0 = arith.constant 0 : index
    %c0_0 = arith.constant 0 : index
    %c0_1 = arith.constant 0 : index
    %0 = vector.load %arg2[%c0, %c0_0, %c0_1] : memref<1x32x16xf32, #tpu.memory_space<vmem>>, vector<1x32x16xf32>
    %1 = vector.shape_cast %0 : vector<1x32x16xf32> to vector<32x16xf32>
    %c0_2 = arith.constant 0 : index
    %c0_3 = arith.constant 0 : index
    %c0_4 = arith.constant 0 : index
    %2 = vector.load %arg3[%c0_2, %c0_3, %c0_4] : memref<1x32x16xf32, #tpu.memory_space<vmem>>, vector<1x32x16xf32>
    %3 = vector.shape_cast %2 : vector<1x32x16xf32> to vector<32x16xf32>
    %c0_5 = arith.constant 0 : index
    %c0_6 = arith.constant 0 : index
    %4 = vector.load %arg7[%c0_5, %c0_6] : memref<64x32xf32, #tpu.memory_space<vmem>>, vector<64x32xf32>
    %cst = arith.constant dense<0.000000e+00> : vector<64x16xf32>
    %5 = tpu.matmul %4, %1, %cst {dimension_numbers = #tpu.dot_dimension_numbers<[1], [0], [0], [1], [0, 0, 1, 1], [], []>} : vector<64x32xf32>, vector<32x16xf32>, vector<64x16xf32> -> vector<64x16xf32>
    %c0_7 = arith.constant 0 : index
    %c0_8 = arith.constant 0 : index
    %6 = vector.load %arg8[%c0_7, %c0_8] : memref<64x1xf32, #tpu.memory_space<vmem>>, vector<64x1xf32>
    %7 = vector.broadcast %6 : vector<64x1xf32> to vector<64x16xf32>
    %8 = arith.addf %5, %7 : vector<64x16xf32>
    %c0_9 = arith.constant 0 : index
    %c0_10 = arith.constant 0 : index
    %9 = vector.load %arg5[%c0_9, %c0_10] : memref<32x32xf32, #tpu.memory_space<vmem>>, vector<32x32xf32>
    %cst_11 = arith.constant dense<0.000000e+00> : vector<32x16xf32>
    %10 = tpu.matmul %9, %3, %cst_11 {dimension_numbers = #tpu.dot_dimension_numbers<[1], [0], [0], [1], [0, 0, 1, 1], [], []>} : vector<32x32xf32>, vector<32x16xf32>, vector<32x16xf32> -> vector<32x16xf32>
    %c0_12 = arith.constant 0 : index
    %c0_13 = arith.constant 0 : index
    %11 = vector.load %arg6[%c0_12, %c0_13] : memref<32x1xf32, #tpu.memory_space<vmem>>, vector<32x1xf32>
    %12 = vector.broadcast %11 : vector<32x1xf32> to vector<32x16xf32>
    %13 = arith.addf %10, %12 : vector<32x16xf32>
    %14 = vector.extract_strided_slice %8 {offsets = [0, 0], sizes = [32, 16], strides = [1, 1]} : vector<64x16xf32> to vector<32x16xf32>
    %15 = vector.shape_cast %14 : vector<32x16xf32> to vector<4x8x16xf32>
    %16 = vector.extract_strided_slice %8 {offsets = [32, 0], sizes = [32, 16], strides = [1, 1]} : vector<64x16xf32> to vector<32x16xf32>
    %17 = vector.shape_cast %16 : vector<32x16xf32> to vector<4x8x16xf32>
    %18 = vector.shape_cast %13 : vector<32x16xf32> to vector<4x8x16xf32>
    %19 = tpu.transpose %18, [0, 2, 1] : vector<4x8x16xf32> -> vector<4x16x8xf32>
    %cst_14 = arith.constant dense<0.000000e+00> : vector<4x16x16xf32>
    %20 = tpu.matmul %19, %15, %cst_14 {dimension_numbers = #tpu.dot_dimension_numbers<[2], [1], [1], [2], [0, 0, 0, 1, 1, 2], [0], [0]>} : vector<4x16x8xf32>, vector<4x8x16xf32>, vector<4x16x16xf32> -> vector<4x16x16xf32>
    %c16_i32 = arith.constant 16 : i32
    %21 = arith.muli %arg1, %c16_i32 : i32
    %22 = tpu.iota {dimensions = array<i32: 0>} : vector<16x16xi32>
    %23 = vector.broadcast %21 : i32 to vector<16x16xi32>
    %24 = arith.addi %23, %22 : vector<16x16xi32>
    %25 = tpu.iota {dimensions = array<i32: 1>} : vector<16x16xi32>
    %26 = arith.cmpi sle, %25, %24 : vector<16x16xi32>
    %c0_15 = arith.constant 0 : index
    %c0_16 = arith.constant 0 : index
    %c0_17 = arith.constant 0 : index
    %27 = vector.load %arg4[%c0_15, %c0_16, %c0_17] : memref<1x1x16xf32, #tpu.memory_space<vmem>>, vector<1x1x16xf32>
    %28 = vector.shape_cast %27 : vector<1x1x16xf32> to vector<1x16xf32>
    %cst_18 = arith.constant 0.000000e+00 : f32
    %29 = vector.broadcast %cst_18 : f32 to vector<1x16xf32>
    %30 = arith.cmpf ogt, %28, %29 : vector<1x16xf32>
    %31 = vector.broadcast %30 : vector<1x16xi1> to vector<16x16xi1>
    %32 = arith.andi %26, %31 : vector<16x16xi1>
    %cst_19 = arith.constant -1.000000e+09 : f32
    %33 = vector.shape_cast %32 : vector<16x16xi1> to vector<1x16x16xi1>
    %34 = vector.broadcast %33 : vector<1x16x16xi1> to vector<4x16x16xi1>
    %35 = vector.broadcast %cst_19 : f32 to vector<4x16x16xf32>
    %36 = arith.select %34, %20, %35 : vector<4x16x16xi1>, vector<4x16x16xf32>
    %cst_20 = arith.constant dense<0xFF800000> : vector<4x16xf32>
    %37 = vector.multi_reduction <maximumf>, %36, %cst_20 [2] : vector<4x16x16xf32> to vector<4x16xf32>
    %38 = vector.shape_cast %37 : vector<4x16xf32> to vector<4x16x1xf32>
    %39 = vector.broadcast %38 : vector<4x16x1xf32> to vector<4x16x16xf32>
    %40 = arith.subf %36, %39 : vector<4x16x16xf32>
    %41 = math.exp %40 : vector<4x16x16xf32>
    %cst_21 = arith.constant dense<0.000000e+00> : vector<4x16xf32>
    %42 = vector.multi_reduction <add>, %41, %cst_21 [2] : vector<4x16x16xf32> to vector<4x16xf32>
    %43 = vector.shape_cast %42 : vector<4x16xf32> to vector<4x16x1xf32>
    %44 = tpu.reciprocal %43 : vector<4x16x1xf32> -> vector<4x16x1xf32>
    %45 = vector.broadcast %44 : vector<4x16x1xf32> to vector<4x16x16xf32>
    %46 = arith.mulf %41, %45 : vector<4x16x16xf32>
    %c0_22 = arith.constant 0 : index
    %c0_23 = arith.constant 0 : index
    %c0_24 = arith.constant 0 : index
    %c0_25 = arith.constant 0 : index
    %47 = vector.load %arg12[%c0_22, %c0_23, %c0_24, %c0_25] : memref<1x4x16x16xf32, #tpu.memory_space<vmem>>, vector<1x4x16x16xf32>
    %48 = vector.shape_cast %47 : vector<1x4x16x16xf32> to vector<4x16x16xf32>
    %49 = vector.shape_cast %46 : vector<4x16x16xf32> to vector<1x4x16x16xf32>
    tpu.vector_store %arg12[%c0_22, %c0_23, %c0_24, %c0_25], %49 {strides = array<i32>} : memref<1x4x16x16xf32, #tpu.memory_space<vmem>>, vector<1x4x16x16xf32>,
    %cst_26 = arith.constant dense<0.000000e+00> : vector<4x8x16xf32>
    %50 = tpu.matmul %17, %46, %cst_26 {dimension_numbers = #tpu.dot_dimension_numbers<[2], [2], [1], [1], [0, 0, 0, 1, 1, 1], [0], [0]>} : vector<4x8x16xf32>, vector<4x16x16xf32>, vector<4x8x16xf32> -> vector<4x8x16xf32>
    %51 = vector.shape_cast %50 : vector<4x8x16xf32> to vector<32x16xf32>
    %c0_27 = arith.constant 0 : index
    %c0_28 = arith.constant 0 : index
    %52 = vector.load %arg9[%c0_27, %c0_28] : memref<32x32xf32, #tpu.memory_space<vmem>>, vector<32x32xf32>
    %cst_29 = arith.constant dense<0.000000e+00> : vector<32x16xf32>
    %53 = tpu.matmul %52, %51, %cst_29 {dimension_numbers = #tpu.dot_dimension_numbers<[1], [0], [0], [1], [0, 0, 1, 1], [], []>} : vector<32x32xf32>, vector<32x16xf32>, vector<32x16xf32> -> vector<32x16xf32>
    %c0_30 = arith.constant 0 : index
    %c0_31 = arith.constant 0 : index
    %54 = vector.load %arg10[%c0_30, %c0_31] : memref<32x1xf32, #tpu.memory_space<vmem>>, vector<32x1xf32>
    %55 = vector.broadcast %54 : vector<32x1xf32> to vector<32x16xf32>
    %56 = arith.addf %53, %55 : vector<32x16xf32>
    %c0_32 = arith.constant 0 : index
    %c0_33 = arith.constant 0 : index
    %c0_34 = arith.constant 0 : index
    %57 = vector.load %arg11[%c0_32, %c0_33, %c0_34] : memref<1x32x16xf32, #tpu.memory_space<vmem>>, vector<1x32x16xf32>
    %58 = vector.shape_cast %57 : vector<1x32x16xf32> to vector<32x16xf32>
    %59 = vector.shape_cast %56 : vector<32x16xf32> to vector<1x32x16xf32>
    tpu.vector_store %arg11[%c0_32, %c0_33, %c0_34], %59 {strides = array<i32>} : memref<1x32x16xf32, #tpu.memory_space<vmem>>, vector<1x32x16xf32>,
    return
  }
  func.func @transform_0(%arg0: i32, %arg1: i32) -> (i32, i32, i32) {
    %c0_i32 = arith.constant 0 : i32
    %c0_i32_0 = arith.constant 0 : i32
    %c0_i32_1 = arith.constant 0 : i32
    return %arg0, %c0_i32, %c0_i32_0 : i32, i32, i32
  }
  func.func @transform_1(%arg0: i32, %arg1: i32) -> (i32, i32, i32) {
    %c0_i32 = arith.constant 0 : i32
    %c0_i32_0 = arith.constant 0 : i32
    return %arg0, %c0_i32, %arg1 : i32, i32, i32
  }
  func.func @transform_2(%arg0: i32, %arg1: i32) -> (i32, i32, i32) {
    %c0_i32 = arith.constant 0 : i32
    %c0_i32_0 = arith.constant 0 : i32
    %c0_i32_1 = arith.constant 0 : i32
    return %arg0, %c0_i32, %c0_i32_0 : i32, i32, i32
  }
  func.func @transform_3(%arg0: i32, %arg1: i32) -> (i32, i32) {
    %c0_i32 = arith.constant 0 : i32
    %c0_i32_0 = arith.constant 0 : i32
    %c0_i32_1 = arith.constant 0 : i32
    return %c0_i32, %c0_i32_0 : i32, i32
  }
  func.func @transform_4(%arg0: i32, %arg1: i32) -> (i32, i32) {
    %c0_i32 = arith.constant 0 : i32
    %c0_i32_0 = arith.constant 0 : i32
    %c0_i32_1 = arith.constant 0 : i32
    return %c0_i32, %c0_i32_0 : i32, i32
  }
  func.func @transform_5(%arg0: i32, %arg1: i32) -> (i32, i32) {
    %c0_i32 = arith.constant 0 : i32
    %c0_i32_0 = arith.constant 0 : i32
    %c0_i32_1 = arith.constant 0 : i32
    return %c0_i32, %c0_i32_0 : i32, i32
  }
  func.func @transform_6(%arg0: i32, %arg1: i32) -> (i32, i32) {
    %c0_i32 = arith.constant 0 : i32
    %c0_i32_0 = arith.constant 0 : i32
    %c0_i32_1 = arith.constant 0 : i32
    return %c0_i32, %c0_i32_0 : i32, i32
  }
  func.func @transform_7(%arg0: i32, %arg1: i32) -> (i32, i32) {
    %c0_i32 = arith.constant 0 : i32
    %c0_i32_0 = arith.constant 0 : i32
    %c0_i32_1 = arith.constant 0 : i32
    return %c0_i32, %c0_i32_0 : i32, i32
  }
  func.func @transform_8(%arg0: i32, %arg1: i32) -> (i32, i32) {
    %c0_i32 = arith.constant 0 : i32
    %c0_i32_0 = arith.constant 0 : i32
    %c0_i32_1 = arith.constant 0 : i32
    return %c0_i32, %c0_i32_0 : i32, i32
  }
  func.func @transform_9(%arg0: i32, %arg1: i32) -> (i32, i32, i32) {
    %c0_i32 = arith.constant 0 : i32
    %c0_i32_0 = arith.constant 0 : i32
    return %arg0, %c0_i32, %arg1 : i32, i32, i32
  }
  func.func @transform_10(%arg0: i32, %arg1: i32) -> (i32, i32, i32, i32) {
    %c0_i32 = arith.constant 0 : i32
    %c0_i32_0 = arith.constant 0 : i32
    %c0_i32_1 = arith.constant 0 : i32
    return %arg0, %c0_i32, %arg1, %c0_i32_0 : i32, i32, i32, i32
  }
}

</mosaic_0001>

<bundles_post_ra>
// kernel: tpu_custom_call.1
= control target key start
LH: loop header
LB: loop body
LE: loop exit
PB: predicated region body
PF: predicated region fallthrough
CT: control target
= control target key end

     0   :  { %16 = vsyncpa [#allocation3], 0  ;;  %s2824_s0 = inlined_call_operand.vmem [shape: f32[2,32,16], index: 0, kind: input, shape index: {}]   ;;  %s2825_s1 = inlined_call_operand.vmem [shape: f32[2,32,16], index: 1, kind: input, shape index: {}]   ;;  %s2826_s2 = inlined_call_operand.vmem [shape: f32[2,1,16], index: 2, kind: input, shape index: {}]   ;;  %s2827_s3 = inlined_call_operand.vmem [shape: f32[32,32], index: 3, kind: input, shape index: {}]   ;;  %s2828_s4 = inlined_call_operand.vmem [shape: f32[32,1], index: 4, kind: input, shape index: {}]   ;;  %s2829_s5 = inlined_call_operand.vmem [shape: f32[64,32], index: 5, kind: input, shape index: {}]   ;;  %s2830_s6 = inlined_call_operand.vmem [shape: f32[64,1], index: 6, kind: input, shape index: {}]   ;;  %s2831_s7 = inlined_call_operand.vmem [shape: f32[32,32], index: 7, kind: input, shape index: {}]   ;;  %s2832_s8 = inlined_call_operand.vmem [shape: f32[32,1], index: 8, kind: input, shape index: {}]   ;;  %s2833_s9 = inlined_call_operand.vmem [shape: f32[2,32,16], index: 9, kind: output, shape index: {0}]   ;;  %s2834_s10 = inlined_call_operand.hbm [shape: f32[2,4,16,16], index: 10, kind: output, shape index: {1}]  }
   0x1   :  { %18 = vsyncpa [#allocation3 + $0x1], 0  ;;  %s2431_s13 = smov 0   ;;  %s2433_s14 = smov 0  }
   0x2   :  { %s2435_s15 = smov 0   ;;  %s2437_s16 = smov 0  }
   0x3   :  { %s2439_s17 = smov 0   ;;  %s2441_s18 = smov 0  }
   0x4 LB: > { %2839 = sst [smem:[#allocation5_spill]] %s2355_s15  ;;  %s1949_s19 = sadd.s32 4294967295, %s2367_s18   ;;  %s2367_s18 = sphi %s2441_s18, %s24_s18   ;;  %s2363_s17 = sphi %s2439_s17, %s2856_s17   ;;  %s2359_s16 = sphi %s2437_s16, %s2855_s16   ;;  %s2355_s15 = sphi %s2435_s15, %s2854_s15   ;;  %s2351_s14 = sphi %s2433_s14, %s2858_s14   ;;  %s2347_s13 = sphi %s2431_s13, %s2857_s13  }
   0x5   : > { %2840 = sst [smem:[#allocation6_spill]] %s2363_s17  ;;  %s1950_s20 = sadd.s32 4294967294, %s2367_s18  }
   0x6   : > { %s36_s21 = sadd.s32 1, %s2363_s17  ;;  %s279_s22 = sadd.s32 1, %s2355_s15 }
   0x7   : > { %p38_p0 = scmp.ge.s32.totalorder %s36_s21, 2  ;;  %p289_p1 = scmp.ne.s32.totalorder %s2355_s15, %s2351_s14 }
   0x8   : > { %p290_p2 = scmp.eq.s32.totalorder %s1949_s19, 1  ;;  %p295_p3 = scmp.ne.s32.totalorder %s2351_s14, %s2347_s13 }
   0x9   : > { %s2860_s21 = smov (%p38_p0, %s36_s21), 0  ;;  %p296_p5 = scmp.eq.s32.totalorder %s1950_s20, 1 }
   0xa   : > { %2841 = sst [smem:[#allocation7_spill]] %s2860_s21  ;;  %p2471_p4 = por %p290_p2, %p289_p1 }
   0xb   : > { %s274_s24 = ssub.s32 %s2363_s17, %s2860_s21  ;;  %p1953_p6 = scmp.ge.s32.totalorder %s2367_s18, 1 }
   0xc   : > { %p277_p7 = scmp.eq.s32.totalorder %s274_s24, 0  ;;  %p2478_p8 = por %p296_p5, %p295_p3 }
   0xd   : > { %p357_p9 = scmp.lt.s32.totalorder %s2367_s18, 3 }
   0xe   : > { %s2843_s25 = scalar_select %p2478_p8, 1, 0 }
   0xf   : > { %s2484_s26 = scalar_select %p277_p7, %s2355_s15, %s279_s22  }
  0x10   : > { %2844 = sst [smem:[#allocation8_spill]] %s2843_s25  ;;  %p358_p10 = pnand %p1953_p6, %p357_p9 }
  0x11   : > { %2845 = sst [smem:[#allocation9_spill]] %s2484_s26  ;;  %p414_p11 = scmp.lt.s32.totalorder (!%p358_p10), %s2359_s16, 1  ;;  %v447_v0 = vld [vmem:[%s2829_s5] sm:$0xff] (!%p358_p10)  ;;  %vm503_vm0 = vcmask (!%p358_p10), 261120   ;;  %v2369_v2 = vmov (!%p358_p10), 0   ;;  %v639_v4 = vld [vmem:[%s2828_s4 + $0x10] sm:$0xff] (!%p358_p10) }
  0x12   : > { %361 = sbr.rel (%p358_p10) target bundleno = 1380 (0x564), region = 56  ;;  %v633_v1 = vld [vmem:[%s2827_s3] sm:$0xff] (!%p358_p10)  ;;  %2066 = vmatprep.mubr.msk.f32.mxu0 (!%p358_p10), %vm503_vm0, %v447_v0  ;;  %2255 = vset.pattern.permute.xlu0 (!%p358_p10), %v2369_v2  ;;  %v638_v5 = vld [vmem:[%s2828_s4 + $0x8] sm:$0xff] (!%p358_p10)  ;;  %v640_v7 = vld [vmem:[%s2828_s4 + $0x18] sm:$0xff] (!%p358_p10)  ;;  %vm886_vm2 = vcmask (!%p358_p10), 64512   ;;  %vm1244_vm8 = vcmask (!%p358_p10), 130048  }
  0x13   : > { %2086 = vmatprep.mubr.msk.f32.mxu1 (!%p358_p10), %vm503_vm0, %v633_v1  ;;  %v637_v3 = vld [vmem:[%s2828_s4] sm:$0xff] (!%p358_p10)  ;;  %2256 = vset.pattern.permute.xlu1 (!%p358_p10), %v2369_v2  ;;  %v456_v22 = vld [vmem:[%s2830_s6 + $0x8] sm:$0xff] (!%p358_p10)  ;;  %v457_v23 = vld [vmem:[%s2830_s6 + $0x10] sm:$0xff] (!%p358_p10)  ;;  %vm2371_vm9 = vmmov (!%p358_p10), 0   ;;  %s411_s25 = sand.u32 (!%p358_p10), 1, %s2351_s14  }
  0x14   : > { %643 = vperm.xlu0 (!%p358_p10), %2255, %v637_v3   ;;  %653 = vperm.xlu1 (!%p358_p10), %2256, %v639_v4   ;;  %v455_v21 = vld [vmem:[%s2830_s6] sm:$0xff] (!%p358_p10)  ;;  %v448_v24 = vld [vmem:[%s2829_s5 + $0x8] sm:$0xff] (!%p358_p10)  ;;  %v458_v25 = vld [vmem:[%s2830_s6 + $0x18] sm:$0xff] (!%p358_p10)  ;;  %v1212_v3 = vlaneseq (!%p358_p10)  ;;  %s1954_s26 = sshll.u32 (!%p358_p10), %s411_s25, 6  ;;  %s2770_s27 = scalar_lea.sflag (!%p358_p10), [#allocation3], %s411_s25 }
  0x15   : > { %v634_v26 = vld [vmem:[%s2827_s3 + $0x8] sm:$0xff] (!%p358_p10)  ;;  %v449_v27 = vld [vmem:[%s2829_s5 + $0x10] sm:$0xff] (!%p358_p10)  ;;  %v450_v29 = vld [vmem:[%s2829_s5 + $0x18] sm:$0xff] (!%p358_p10) }
  0x16   : > { %v635_v28 = vld [vmem:[%s2827_s3 + $0x10] sm:$0xff] (!%p358_p10)  ;;  %v636_v30 = vld [vmem:[%s2827_s3 + $0x18] sm:$0xff] (!%p358_p10)  ;;  %v451_v51 = vld [vmem:[%s2829_s5 + $0x20] sm:$0xff] (!%p358_p10)  ;;  %v1213_v4 = vshrl.u32 (!%p358_p10), %v1212_v3, 7 }
  0x17   : > { %v452_v52 = vld [vmem:[%s2829_s5 + $0x28] sm:$0xff] (!%p358_p10)  ;;  %v453_v1 = vld [vmem:[%s2829_s5 + $0x30] sm:$0xff] (!%p358_p10)  ;;  %vm2697_vm10 = vmpackc.low (!%p358_p10), %vm1244_vm8, %vm1244_vm8 }
  0x18   : > { %648 = vperm.xlu0 (!%p358_p10), %2255, %v638_v5   ;;  %658 = vperm.xlu1 (!%p358_p10), %2256, %v640_v7   ;;  %v1227_v5 = vsub.s32 (!%p358_p10), 0, %v1213_v4  ;;  %v1214_v7 = vadd.s32 (!%p358_p10), 8, %v1213_v4 }
  0x19   : > { %s415_s11 = scalar_select %p414_p11, %s2359_s16, 1 }
  0x1b   : > { %s2502_s24 = sshll.u32 %s415_s11, 5  ;;  %s429_s29 = scalar_lea.vmem %s2826_s2, %s415_s11 }
  0x1c   : > { %s418_s17 = scalar_lea.vmem %s2824_s0, %s2502_s24  ;;  %s426_s22 = scalar_lea.vmem %s2825_s1, %s2502_s24  ;;  %v1222_v6 = vld [vmem:[%s429_s29] sm:$0x1]  ;;  %465 = vperm.xlu0 %2255, %v455_v21   ;;  %470 = vperm.xlu1 %2256, %v456_v22  }
  0x1d   : > { %v439_v8 = vld [vmem:[%s418_s17] sm:$0xff]  ;;  %v440_v9 = vld [vmem:[%s418_s17 + $0x8] sm:$0xff]  ;;  %vm1223_vm1 = vcmp.gt.f32.partialorder %v1222_v6, 0.0  ;;  %v441_v13 = vld [vmem:[%s418_s17 + $0x10] sm:$0xff] }
  0x1e   : > { %v443_v10 = vld [vmem:[%s426_s22] sm:$0xff]  ;;  %v2154_v11 = vpack.c.bf16 %v440_v9, %v439_v8  ;;  %v444_v12 = vld [vmem:[%s426_s22 + $0x8] sm:$0xff]  ;;  %v442_v14 = vld [vmem:[%s418_s17 + $0x18] sm:$0xff]  ;;  %v2521_v15 = vsel %vm1223_vm1, 1, %v2369_v2  ;;  %v1219_v8 = vand.u32 127, %v1212_v3  ;;  %s2691_s17 = scalar_lea.vmem [#allocation2], %s1954_s26 }
  0x1f   : > { %v2162_v16 = vpack.c.bf16 %v444_v12, %v443_v10  ;;  %v2158_v17 = vpack.c.bf16 %v442_v14, %v441_v13  ;;  %v445_v18 = vld [vmem:[%s426_s22 + $0x10] sm:$0xff]  ;;  %v446_v19 = vld [vmem:[%s426_s22 + $0x18] sm:$0xff]  ;;  %v1228_v6 = vrot.slane %v2521_v15, %v1227_v5  ;;  %s2005_s22 = sshll.u32 %s2359_s16, 10  ;;  %s1813_s15 = sshll.u32 %s2691_s17, 4  ;;  %s2766_s15 = int_to_ptr.vmem [resolvable:$true] %s1813_s15 }
  0x20   : > { %2155 = vmatprep.subr.bf16.mxu0 %v2154_v11  ;;  %v2166_v20 = vpack.c.bf16 %v446_v19, %v445_v18  ;;  %475 = vperm.xlu0 %2255, %v457_v23   ;;  %v454_v2 = vld [vmem:[%s2829_s5 + $0x38] sm:$0xff]  ;;  %vm1221_vm3 = vcmp.le.s32.totalorder %v1219_v8, %v1214_v7  ;;  %vm1220_vm5 = vcmp.le.s32.totalorder %v1219_v8, %v1213_v4  ;;  %s2764_s11 = scalar_lea.hbm %s2834_s10, %s2005_s22  ;;  %s2289_s28 = scalar_lea.vmem %s2766_s15, 1024 }
  0x21   : > { %2163 = vmatprep.subr.bf16.mxu1 %v2162_v16  ;;  %2157 = vmatpush3.bf16.msra.mxu0 %v2154_v11  ;;  %vm1229_vm4 = vcmp.eq.s32.totalorder %v1228_v6, 1  ;;  %p2290_p12 = scmp.ne.s32.totalorder %s2766_s15, %s2289_s28  ;;  %s2373_s16 = smov [#allocation2]  }
  0x22   : > { %2165 = vmatpush3.bf16.msra.mxu1 %v2162_v16  ;;  %2159 = vmatprep.subr.bf16.mxu0 %v2158_v17  ;;  %vm2584_vm6 = vmand %vm1221_vm3, %vm1229_vm4 }
  0x23   : > { %2167 = vmatprep.subr.bf16.mxu1 %v2166_v20  ;;  %480 = vperm.xlu1 %2256, %v458_v25   ;;  %vm2588_vm7 = vmand %vm1220_vm5, %vm1229_vm4  ;;  %p2291_p13 = pnand %p2290_p12, %p2471_p4 }
  0x25   : > { %2161 = vmatpush3.bf16.msra.mxu0 %v2158_v17  ;;  %p2292_p0 = pneg %p2291_p13 }
  0x26   : > { %2169 = vmatpush3.bf16.msra.mxu1 %v2166_v20 }
  0x28   : > { %2067 = vmatmul.mubr.msk.f32.vlgmr.msra.gmra.mrb[0].mxu0 %vm503_vm0, %v448_v24 }
  0x29   : > { %2087 = vmatmul.mubr.msk.f32.vlgmr.msra.gmra.mrb[0].mxu1 %vm503_vm0, %v634_v26  ;;  %2069 = vmatprep.mubr.msk.f32.mxu0 %vm503_vm0, %v449_v27 }
  0x2a   : > { %2089 = vmatprep.mubr.msk.f32.mxu1 %vm503_vm0, %v635_v28 }
  0x2c   : > { %2070 = vmatmul.mubr.msk.f32.gmra.mrb[2].mxu0 %vm503_vm0, %v450_v29 }
  0x2d   : > { %2090 = vmatmul.mubr.msk.f32.gmra.mrb[2].mxu1 %vm503_vm0, %v636_v30  ;;  %2072 = vmatprep.mubr.msk.f32.mxu0 %vm503_vm0, %v451_v51 }
  0x30   : > { %2073 = vmatmul.mubr.msk.f32.gmra.mrb[4].mxu0 %vm503_vm0, %v452_v52 }
  0x31   : > { %2075 = vmatprep.mubr.msk.f32.mxu0 %vm503_vm0, %v453_v1 }
  0x34   : > { %2076 = vmatmul.mubr.msk.f32.gmra.mrb[6].mxu0 %vm503_vm0, %v454_v2 }
  0x93   : > { %v644_v31 = vpop.permute.xlu0 %643  ;;  %v654_v32 = vpop.permute.xlu1 %653 }
  0x97   : > { %v649_v33 = vpop.permute.xlu0 %648  ;;  %v659_v34 = vpop.permute.xlu1 %658 }
  0x9b   : > { %v466_v35 = vpop.permute.xlu0 %465  ;;  %v471_v37 = vpop.permute.xlu1 %470 }
  0x9f   : > { %v476_v53 = vpop.permute.xlu0 %475 }
  0xa2   : > { %v481_v54 = vpop.permute.xlu1 %480 }
  0xfb   : > { %v2068_v36 = vpop.f32.mrb[0].mxu0 }
  0xfc   : > { %v2088_v38 = vpop.f32.mrb[0].mxu1  ;;  %v594_v39 = vpop.f32.mrb[1].mxu0  ;;  %v600_v43 = vadd.f32 %v2068_v36, %v471_v37 }
  0xfd   : > { %v745_v40 = vadd.f32 %v2088_v38, %v649_v33  ;;  %v595_v41 = vadd.f32 %v594_v39, %v466_v35  ;;  %v739_v42 = vpop.f32.mrb[1].mxu1  ;;  %v460_v35 = vld [vmem:[%s2830_s6 + $0x28] sm:$0xff]  ;;  %v459_v38 = vld [vmem:[%s2830_s6 + $0x20] sm:$0xff] }
  0xfe   : > { %v740_v44 = vadd.f32 %v739_v42, %v644_v31 }
  0xff   : > { %790 = vxpose.xlu1.b32.start.end [1/1] (short) (narrow) %v745_v40, 16  ;;  %v2071_v45 = vpop.f32.mrb[2].mxu0  ;;  %2092 = vmatprep.subr.mxu1 %v595_v41 }
 0x100   : > { %758 = vxpose.xlu0.b32.start.end [1/1] (short) (narrow) %v740_v44, 16  ;;  %v604_v46 = vpop.f32.mrb[3].mxu0  ;;  %v2091_v47 = vpop.f32.mrb[2].mxu1  ;;  %2093 = vmatpush3.msra.mxu1 %v595_v41  ;;  %v610_v61 = vadd.f32 %v2071_v45, %v481_v54 }
 0x101   : > { %v749_v48 = vpop.f32.mrb[3].mxu1  ;;  %2097 = vmatprep.subr.mxu1 %v600_v43  ;;  %v755_v50 = vadd.f32 %v2091_v47, %v659_v34  ;;  %v605_v58 = vadd.f32 %v604_v46, %v476_v53 }
 0x102   : > { %v750_v49 = vadd.f32 %v749_v48, %v654_v32 }
 0x103   : > { %v2619_v36 = vpop.f32.mrb[4].mxu0 }
 0x104   : > { %v2621_v37 = vpop.f32.mrb[5].mxu0 }
 0x105   : > { %822 = vxpose.xlu0.b32.start.end [1/1] (short) (narrow) %v750_v49, 16 }
 0x10a   : > { %854 = vxpose.xlu0.b32.start.end [1/1] (short) (narrow) %v755_v50, 16 }
 0x17f   : > { %v806_v56 = vpop.trf.xlu1 }
 0x180   : > { %v774_v55 = vpop.trf.xlu0 }
 0x181   : > { %2094 = vmatprep.mubr.msk.f32.mxu1 %vm886_vm2, %v774_v55 }
 0x183   : > { %v807_v59 = vpop.trf.xlu1 }
 0x184   : > { %v775_v57 = vpop.trf.xlu0 }
 0x185   : > { %2095 = vmatmul.mubr.msk.f32.vlgmr.msra.gmra.mrb[4].mxu1 %vm886_vm2, %v775_v57 }
 0x186   : > { %2098 = vmatpush3.msra.mxu1 %v600_v43  ;;  %2099 = vmatprep.mubr.msk.f32.mxu1 %vm886_vm2, %v806_v56 }
 0x187   : > { %2102 = vmatprep.subr.mxu1 %v605_v58 }
 0x188   : > { %v838_v60 = vpop.trf.xlu0 }
 0x189   : > { %2100 = vmatmul.mubr.msk.f32.vlgmr.msra.gmra.mrb[6].mxu1 %vm886_vm2, %v807_v59 }
 0x18a   : > { %2103 = vmatpush3.msra.mxu1 %v605_v58  ;;  %2104 = vmatprep.mubr.msk.f32.mxu1 %vm886_vm2, %v838_v60 }
 0x18b   : > { %2107 = vmatprep.subr.mxu1 %v610_v61 }
 0x18c   : > { %v839_v62 = vpop.trf.xlu0 }
 0x18d   : > { %2105 = vmatmul.mubr.msk.f32.vlgmr.msra.gmra.mrb[8].mxu1 %vm886_vm2, %v839_v62 }
 0x18e   : > { %2108 = vmatpush3.msra.mxu1 %v610_v61 }
 0x190   : > { %v870_v63 = vpop.trf.xlu0 }
 0x191   : > { %2109 = vmatprep.mubr.msk.f32.mxu1 %vm886_vm2, %v870_v63 }
 0x194   : > { %v871_v0 = vpop.trf.xlu0 }
 0x195   : > { %2110 = vmatmul.mubr.msk.f32.vlgmr.msra.gmra.mrb[10].mxu1 %vm886_vm2, %v871_v0 }
 0x258   : > { %v2096_v11 = vpop.f32.mrb[4].mxu1 }
 0x259   : > { %v1237_v12 = vsel %vm2584_vm6, %v2096_v11, -1e+09  ;;  %v959_v13 = vpop.f32.mrb[5].mxu1 }
 0x25a   : > { %v1236_v14 = vsel %vm2588_vm7, %v959_v13, -1e+09  ;;  %v1248_v15 = vsel %vm1244_vm8, %v1237_v12, -inf }
 0x25b   : > { %1249 = vmax.xlane.f32.xlu1 %v1248_v15  ;;  %v1245_v16 = vsel %vm1244_vm8, %v1236_v14, -inf  ;;  %v461_v15 = vld [vmem:[%s2830_s6 + $0x30] sm:$0xff] }
 0x25c   : > { %1246 = vmax.xlane.f32.xlu0 %v1245_v16  ;;  %v2101_v17 = vpop.f32.mrb[6].mxu1  ;;  %v2370_v16 = vmov 0.0|0.0  }
 0x25d   : > { %v1239_v18 = vsel %vm2584_vm6, %v2101_v17, -1e+09  ;;  %v1040_v19 = vpop.f32.mrb[7].mxu1  ;;  %2170 = vmatprep.subr.bf16.mxu0 %v2370_v16  ;;  %2174 = vmatprep.subr.bf16.mxu1 %v2370_v16  ;;  %v2663_v17 = vpop.f32.mrb[6].mxu0 }
 0x25e   : > { %v1238_v20 = vsel %vm2588_vm7, %v1040_v19, -1e+09  ;;  %v1254_v21 = vsel %vm1244_vm8, %v1239_v18, -inf  ;;  %v2668_v19 = vpop.f32.mrb[7].mxu0 }
 0x25f   : > { %1255 = vmax.xlane.f32.xlu1 %v1254_v21  ;;  %v1251_v26 = vsel %vm1244_vm8, %v1238_v20, -inf  ;;  %v2372_v21 = vmov 0.0  }
 0x260   : > { %v2106_v22 = vpop.f32.mrb[8].mxu1  ;;  %2116 = vmatprep.mubr.msk.f32.mxu0 %vm2371_vm9, %v2372_v21  ;;  %2123 = vmatprep.mubr.msk.f32.mxu1 %vm2371_vm9, %v2372_v21 }
 0x261   : > { %v1241_v23 = vsel %vm2584_vm6, %v2106_v22, -1e+09  ;;  %v1121_v24 = vpop.f32.mrb[9].mxu1  ;;  %v1663_v22 = vld [vmem:[%s2832_s8 + $0x10] sm:$0xff] }
 0x262   : > { %v1240_v25 = vsel %vm2588_vm7, %v1121_v24, -1e+09  ;;  %v1260_v28 = vsel %vm1244_vm8, %v1241_v23, -inf  ;;  %v1664_v24 = vld [vmem:[%s2832_s8 + $0x18] sm:$0xff] }
 0x263   : > { %1252 = vmax.xlane.f32.xlu1 %v1251_v26  ;;  %v1257_v27 = vsel %vm1244_vm8, %v1240_v25, -inf }
 0x264   : > { %1258 = vmax.xlane.f32.xlu0 %v1257_v27 }
 0x267   : > { %1261 = vmax.xlane.f32.xlu1 %v1260_v28 }
 0x268   : > { %v2111_v29 = vpop.f32.mrb[10].mxu1 }
 0x269   : > { %v1243_v30 = vsel %vm2584_vm6, %v2111_v29, -1e+09  ;;  %v1202_v31 = vpop.f32.mrb[11].mxu1 }
 0x26a   : > { %v1242_v32 = vsel %vm2588_vm7, %v1202_v31, -1e+09  ;;  %v1266_v33 = vsel %vm1244_vm8, %v1243_v30, -inf }
 0x26b   : > { %1267 = vmax.xlane.f32.xlu1 %v1266_v33  ;;  %v1263_v34 = vsel %vm1244_vm8, %v1242_v32, -inf }
 0x26c   : > { %1264 = vmax.xlane.f32.xlu0 %v1263_v34 }
 0x27c   : > { %490 = vperm.xlu1 %2256, %v460_v35  }
 0x282   : > { %485 = vperm.xlu0 %2255, %v459_v38  }
 0x2e8   : > { %v1250_v39 = vpop.xlane.xlu1 %1249 }
 0x2e9   : > { %v1270_v40 = vsub.f32 %v1237_v12, %v1250_v39  ;;  %v1247_v41 = vpop.xlane.xlu0 %1246 }
 0x2ea   : > { %v1269_v42 = vsub.f32 %v1236_v14, %v1247_v41 }
 0x2eb   : > { %v1279_v43 = vmul.f32 1.442695, %v1270_v40 }
 0x2ec   : > { %v1277_v44 = vmul.f32 1.442695, %v1269_v42  ;;  %v1256_v45 = vpop.xlane.xlu1 %1255 }
 0x2ed   : > { %2257 = vpow2.f32 %v1279_v43  ;;  %v1272_v46 = vsub.f32 %v1239_v18, %v1256_v45  ;;  %v1661_v18 = vld [vmem:[%s2832_s8] sm:$0xff] }
 0x2ee   : > { %2259 = vpow2.f32 %v1277_v44 }
 0x2ef   : > { %v1283_v47 = vmul.f32 1.442695, %v1272_v46 }
 0x2f0   : > { %v1253_v48 = vpop.xlane.xlu1 %1252 }
 0x2f1   : > { %2261 = vpow2.f32 %v1283_v47  ;;  %v1271_v49 = vsub.f32 %v1238_v20, %v1253_v48  ;;  %v1259_v50 = vpop.xlane.xlu0 %1258  ;;  %v462_v20 = vld [vmem:[%s2830_s6 + $0x38] sm:$0xff] }
 0x2f2   : > { %v1273_v51 = vsub.f32 %v1240_v25, %v1259_v50 }
 0x2f3   : > { %v1281_v52 = vmul.f32 1.442695, %v1271_v49 }
 0x2f4   : > { %v1285_v53 = vmul.f32 1.442695, %v1273_v51  ;;  %v1262_v54 = vpop.xlane.xlu1 %1261 }
 0x2f5   : > { %2263 = vpow2.f32 %v1281_v52  ;;  %v1274_v55 = vsub.f32 %v1241_v23, %v1262_v54  ;;  %v1662_v23 = vld [vmem:[%s2832_s8 + $0x8] sm:$0xff] }
 0x2f6   : > { %2265 = vpow2.f32 %v1285_v53 }
 0x2f7   : > { %v2626_v56 = vpop.eup %2257  ;;  %v1287_v57 = vmul.f32 1.442695, %v1274_v55 }
 0x2f8   : > { %v2628_v58 = vpop.eup %2259  ;;  %v1268_v59 = vpop.xlane.xlu1 %1267  ;;  %v1296_v60 = vsel %vm1244_vm8, %v2626_v56, 0.0 }
 0x2f9   : > { %2267 = vpow2.f32 %v1287_v57  ;;  %v1276_v61 = vsub.f32 %v1243_v30, %v1268_v59  ;;  %1297 = vadd.xlane.f32.xlu1 %v1296_v60  ;;  %v1265_v62 = vpop.xlane.xlu0 %1264  ;;  %v1293_v63 = vsel %vm1244_vm8, %v2628_v58, 0.0 }
 0x2fa   : > { %v1275_v0 = vsub.f32 %v1242_v32, %v1265_v62  ;;  %1294 = vadd.xlane.f32.xlu0 %v1293_v63  ;;  %v1657_v62 = vld [vmem:[%s2831_s7] sm:$0xff] }
 0x2fb   : > { %v2634_v1 = vpop.eup %2261  ;;  %v1291_v2 = vmul.f32 1.442695, %v1276_v61 }
 0x2fc   : > { %v1289_v3 = vmul.f32 1.442695, %v1275_v0  ;;  %v1302_v4 = vsel %vm1244_vm8, %v2634_v1, 0.0  ;;  %v491_v25 = vpop.permute.xlu1 %490 }
 0x2fd   : > { %2269 = vpow2.f32 %v1291_v2  ;;  %1303 = vadd.xlane.f32.xlu1 %v1302_v4 }
 0x2fe   : > { %2271 = vpow2.f32 %v1289_v3 }
 0x2ff   : > { %v2638_v5 = vpop.eup %2263 }
 0x300   : > { %v1299_v6 = vsel %vm1244_vm8, %v2638_v5, 0.0  ;;  %v2642_v7 = vpop.eup %2265 }
 0x301   : > { %1300 = vadd.xlane.f32.xlu0 %v1299_v6  ;;  %v1305_v10 = vsel %vm1244_vm8, %v2642_v7, 0.0  ;;  %v486_v26 = vpop.permute.xlu0 %485 }
 0x302   : > { %v615_v47 = vadd.f32 %v2621_v37, %v486_v26 }
 0x303   : > { %v2644_v8 = vpop.eup %2267 }
 0x304   : > { %v1308_v9 = vsel %vm1244_vm8, %v2644_v8, 0.0 }
 0x305   : > { %1309 = vadd.xlane.f32.xlu1 %v1308_v9  ;;  %1306 = vadd.xlane.f32.xlu0 %v1305_v10  ;;  %v1658_v9 = vld [vmem:[%s2831_s7 + $0x8] sm:$0xff]  ;;  %v1659_v10 = vld [vmem:[%s2831_s7 + $0x10] sm:$0xff] }
 0x307   : > { %v2650_v11 = vpop.eup %2269 }
 0x308   : > { %v2652_v12 = vpop.eup %2271  ;;  %v1314_v13 = vsel %vm1244_vm8, %v2650_v11, 0.0 }
 0x309   : > { %1315 = vadd.xlane.f32.xlu1 %v1314_v13  ;;  %v1311_v14 = vsel %vm1244_vm8, %v2652_v12, 0.0 }
 0x30a   : > { %1312 = vadd.xlane.f32.xlu0 %v1311_v14 }
 0x31a   : > { %495 = vperm.xlu1 %2256, %v461_v15  }
 0x31e   : > { %1667 = vperm.xlu1 %2256, %v1661_v18  }
 0x320   : > { %500 = vperm.xlu0 %2255, %v462_v20  }
 0x322   : > { %1677 = vperm.xlu1 %2256, %v1663_v22  }
 0x324   : > { %1672 = vperm.xlu0 %2255, %v1662_v23  }
 0x328   : > { %1682 = vperm.xlu0 %2255, %v1664_v24  }
 0x386   : > { %v1298_v27 = vpop.xlane.xlu1 %1297 }
 0x387   : > { %2273 = vrcp.f32 %v1298_v27  ;;  %v1295_v28 = vpop.xlane.xlu0 %1294 }
 0x388   : > { %2275 = vrcp.f32 %v1295_v28 }
 0x38a   : > { %v1304_v29 = vpop.xlane.xlu1 %1303 }
 0x38b   : > { %2277 = vrcp.f32 %v1304_v29 }
 0x38e   : > { %v1301_v30 = vpop.xlane.xlu0 %1300 }
 0x38f   : > { %2279 = vrcp.f32 %v1301_v30 }
 0x391   : > { %v2274_v31 = vpop.eup %2273 }
 0x392   : > { %v2276_v32 = vpop.eup %2275  ;;  %v1326_v33 = vmul.f32 %v2274_v31, %v2626_v56  ;;  %v1310_v34 = vpop.xlane.xlu1 %1309  ;;  %v620_v56 = vadd.f32 %v2619_v36, %v491_v25 }
 0x393   : > { %v1307_v35 = vpop.xlane.xlu0 %1306  ;;  %v1325_v38 = vmul.f32 %v2276_v32, %v2628_v58  ;;  %2281 = vrcp.f32 %v1310_v34 }
 0x394   : > { %1334 = vst.msk [vmem:[%s2691_s17 + $0x8] sm:$0xff] %vm1244_vm8, %v1326_v33  ;;  %2283 = vrcp.f32 %v1307_v35 }
 0x395   : > { %v2278_v40 = vpop.eup %2277  ;;  %1333 = vst.msk [vmem:[%s2691_s17] sm:$0xff] %vm1244_vm8, %v1325_v38  ;;  %v2171_v41 = vpack.c.bf16 %v1326_v33, %v1325_v38 }
 0x396   : > { %v1328_v42 = vmul.f32 %v2278_v40, %v2634_v1  ;;  %v1316_v43 = vpop.xlane.xlu1 %1315 }
 0x397   : > { %2285 = vrcp.f32 %v1316_v43  ;;  %2173 = vmatpush3.bf16.xpose.msk.msra.mxu0 %vm2697_vm10, %v2171_v41  ;;  %v1313_v44 = vpop.xlane.xlu0 %1312 }
 0x398   : > { %1336 = vst.msk [vmem:[%s2691_s17 + $0x18] sm:$0xff] %vm1244_vm8, %v1328_v42  ;;  %2287 = vrcp.f32 %v1313_v44  ;;  %2178 = vmatprep.subr.bf16.mxu0 %v2370_v16 }
 0x399   : > { %v2280_v45 = vpop.eup %2279 }
 0x39a   : > { %v1327_v46 = vmul.f32 %v2280_v45, %v2638_v5  ;;  %v496_v58 = vpop.permute.xlu1 %495 }
 0x39b   : > { %v625_v36 = vadd.f32 %v2668_v19, %v496_v58 }
 0x39c   : > { %1335 = vst.msk [vmem:[%s2691_s17 + $0x10] sm:$0xff] %vm1244_vm8, %v1327_v46  ;;  %v2175_v48 = vpack.c.bf16 %v1328_v42, %v1327_v46 }
 0x39d   : > { %v2282_v49 = vpop.eup %2281 }
 0x39e   : > { %v2284_v50 = vpop.eup %2283  ;;  %v1330_v51 = vmul.f32 %v2282_v49, %v2644_v8  ;;  %2117 = vmatmul.mubr.msk.f32.vlgmr.msra.gmra.mrb[8].mxu0 %vm1244_vm8, %v615_v47  ;;  %2177 = vmatpush3.bf16.xpose.msk.msra.mxu1 %vm2697_vm10, %v2175_v48 }
 0x39f   : > { %v1329_v52 = vmul.f32 %v2284_v50, %v2642_v7  ;;  %2182 = vmatprep.subr.bf16.mxu1 %v2370_v16  ;;  %2130 = vmatprep.mubr.msk.f32.mxu0 %vm2371_vm9, %v2372_v21  ;;  %v501_v60 = vpop.permute.xlu0 %500 }
 0x3a0   : > { %1338 = vst.msk [vmem:[%s2691_s17 + $0x28] sm:$0xff] %vm1244_vm8, %v1330_v51  ;;  %v630_v61 = vadd.f32 %v2663_v17, %v501_v60 }
 0x3a1   : > { %v2286_v37 = vpop.eup %2285  ;;  %1337 = vst.msk [vmem:[%s2691_s17 + $0x20] sm:$0xff] %vm1244_vm8, %v1329_v52  ;;  %v2179_v53 = vpack.c.bf16 %v1330_v51, %v1329_v52 }
 0x3a2   : > { %v2288_v54 = vpop.eup %2287  ;;  %v1332_v55 = vmul.f32 %v2286_v37, %v2650_v11  ;;  %v1660_v11 = vld [vmem:[%s2831_s7 + $0x18] sm:$0xff] }
 0x3a3   : > { %v1331_v57 = vmul.f32 %v2288_v54, %v2652_v12  ;;  %2181 = vmatpush3.bf16.xpose.msk.msra.mxu0 %vm2697_vm10, %v2179_v53 }
 0x3a4   : > { %1340 = vst.msk [vmem:[%s2691_s17 + $0x38] sm:$0xff] %vm1244_vm8, %v1332_v55 }
 0x3a5   : > { %1339 = vst.msk [vmem:[%s2691_s17 + $0x30] sm:$0xff] %vm1244_vm8, %v1331_v57  ;;  %2124 = vmatmul.mubr.msk.f32.vlgmr.msra.gmra.mrb[12].mxu1 %vm1244_vm8, %v620_v56  ;;  %v2183_v59 = vpack.c.bf16 %v1332_v55, %v1331_v57  ;;  %s2293_s17 = sshll.u32 %s2373_s16, 4  ;;  %s2294_s17 = int_to_ptr.vmem [resolvable:$false] %s2293_s17 }
 0x3a6   : > { %2137 = vmatprep.mubr.msk.f32.mxu1 %vm2371_vm9, %v2372_v21  ;;  %s2295_s29 = scalar_lea.vmem %s2294_s17, 2048  ;;  %p2296_p1 = scmp.lt.s32.totalorder %s2766_s15, %s2294_s17 }
 0x3a7   : > { %2185 = vmatpush3.bf16.xpose.msk.msra.mxu1 %vm2697_vm10, %v2183_v59  ;;  %p2297_p2 = scmp.lt.s32.totalorder %s2295_s29, %s2289_s28 }
 0x3a9   : > { %p2298_p3 = por %p2297_p2, %p2296_p1 }
 0x3aa   : > { %2131 = vmatmul.mubr.msk.f32.vlgmr.msra.gmra.mrb[10].mxu0 %vm1244_vm8, %v625_v36 }
 0x3ab   : > { %2148 = vmatprep.mubr.msk.f32.mxu0 %vm503_vm0, %v1657_v62  ;;  %p2299_p5 = pnand %p2298_p3, %p2292_p0 }
 0x3ae   : > { %2138 = vmatmul.mubr.msk.f32.vlgmr.msra.gmra.mrb[14].mxu1 %vm1244_vm8, %v630_v61 }
 0x471   : > { %v1416_v63 = vpop.f32.mrb[8].mxu0 }
 0x472   : > { %v2118_v0 = vpop.f32.mrb[9].mxu0 }
 0x478   : > { %v1495_v1 = vpop.f32.mrb[12].mxu1 }
 0x479   : > { %v2186_v2 = vpack.c.bf16 %v1495_v1, %v1416_v63  ;;  %v2125_v3 = vpop.f32.mrb[13].mxu1 }
 0x47b   : > { %2187 = vmatprep.subr.bf16.mxu0 %v2186_v2 }
 0x47c   : > { %2189 = vmatpush3.bf16.msra.mxu0 %v2186_v2 }
 0x47d   : > { %v1574_v4 = vpop.f32.mrb[10].mxu0 }
 0x47e   : > { %v2132_v5 = vpop.f32.mrb[11].mxu0 }
 0x481   : > { %v1653_v6 = vpop.f32.mrb[14].mxu1 }
 0x482   : > { %v2190_v7 = vpack.c.bf16 %v1653_v6, %v1574_v4  ;;  %v2139_v8 = vpop.f32.mrb[15].mxu1 }
 0x484   : > { %2191 = vmatprep.subr.bf16.mxu0 %v2190_v7 }
 0x485   : > { %2193 = vmatpush3.bf16.msra.mxu0 %v2190_v7 }
 0x488   : > { %2149 = vmatmul.mubr.msk.f32.vlgmr.msra.gmra.mrb[12].mxu0 %vm503_vm0, %v1658_v9 }
 0x489   : > { %2151 = vmatprep.mubr.msk.f32.mxu0 %vm503_vm0, %v1659_v10 }
 0x48c   : > { %2152 = vmatmul.mubr.msk.f32.gmra.mrb[14].mxu0 %vm503_vm0, %v1660_v11 }
 0x48d   : > { %2302 = shalt.err (!%p2299_p5)
}
 0x48e   : > { %s2303_s25 = scalar_lea.hbm %s2764_s11, 1024  ;;  %s2307_s19 = scalar_lea.hbm %s2834_s10, 2048 }
 0x48f   : > { %p2304_p6 = scmp.ne.s32.totalorder %s2764_s11, %s2303_s25  ;;  %p2308_p10 = scmp.lt.u32.totalorder %s2764_s11, %s2834_s10 }
 0x490   : > { %p2309_p11 = scmp.lt.u32.totalorder %s2307_s19, %s2303_s25  ;;  %p2311_p13 = scmp.lt.u32.totalorder %s2303_s25, %s2764_s11 }
 0x491   : > { %p2305_p7 = pnand %p2304_p6, %p2471_p4 }
 0x492   : > { %p2310_p12 = por %p2309_p11, %p2308_p10 }
 0x493   : > { %p2306_p9 = pneg %p2305_p7 }
 0x494   : > { %p2312_p0 = por %p2311_p13, %p2310_p12 }
 0x496   : > { %p2313_p1 = pnand %p2312_p0, %p2306_p9 }
 0x498   : > { %2316 = shalt.err (!%p2313_p1)
}
 0x499   : > { %s2374_s21 = smov 128   ;;  %s2375_s26 = smov 8   ;;  %v1673_v12 = vpop.permute.xlu0 %1672  ;;  %v1668_v13 = vpop.permute.xlu1 %1667 }
 0x49a   : > { %2194 = dma.vmem_to_hbm [thread:$0]  (%p2471_p4), %s2766_s15, 1024, %s2764_s11, %s2770_s27, %s2374_s21, %s2374_s21, %s2375_s26  }
 0x49b   : > { %s437_s17 = scalar_lea.vmem %s2833_s9, %s2502_s24 }
 0x49d   : > { %v1683_v18 = vpop.permute.xlu0 %1682  ;;  %v1678_v20 = vpop.permute.xlu1 %1677 }
 0x55b   : > { %v2150_v14 = vpop.f32.mrb[12].mxu0 }
 0x55c   : > { %v1769_v15 = vadd.f32 %v2150_v14, %v1673_v12  ;;  %v1763_v16 = vpop.f32.mrb[13].mxu0 }
 0x55d   : > { %v1764_v17 = vadd.f32 %v1763_v16, %v1668_v13 }
 0x55e   : > { %1783 = vst.msk [vmem:[%s437_s17 + $0x8] sm:$0xff] %vm1244_vm8, %v1769_v15 }
 0x55f   : > { %1782 = vst.msk [vmem:[%s437_s17] sm:$0xff] %vm1244_vm8, %v1764_v17  ;;  %v2153_v19 = vpop.f32.mrb[14].mxu0 }
 0x560   : > { %v1779_v21 = vadd.f32 %v2153_v19, %v1683_v18  ;;  %v1773_v22 = vpop.f32.mrb[15].mxu0 }
 0x561   : > { %v1774_v23 = vadd.f32 %v1773_v22, %v1678_v20 }
 0x562   : > { %1785 = vst.msk [vmem:[%s437_s17 + $0x18] sm:$0xff] %vm1244_vm8, %v1779_v21 }
 0x563   : > { %1784 = vst.msk [vmem:[%s437_s17 + $0x10] sm:$0xff] %vm1244_vm8, %v1774_v23 }
 0x564 PF: > { %p2200_p4 = scmp.ge.s32.totalorder %s2367_s18, 2  ;;  %s1839_s24 = sand.u32 1, %s2347_s13  }
 0x565   : > { %s1840_s15 = scalar_lea.sflag [#allocation3], %s1839_s24 }
 0x566   : > { %p2197_p2 = pnand %p2200_p4, %p2478_p8 }
 0x568   : > { %2342 = dma.done.wait (!%p2197_p2), %s1840_s15, 1024  }
 0x569   : > { %2344 = vsyncadd (!%p2197_p2), %s1840_s15, 4294966272  ;;  %s24_s18 = sadd.s32 1, %s2367_s18   ;;  %s2853_s11 = sld [smem:[#allocation5_spill]] }
 0x56a   : > { %p21_p3 = scmp.ge.s32.totalorder %s24_s18, 4   ;;  %s2854_s15 = sld [smem:[#allocation9_spill]] }
 0x56b   : > { %s2855_s16 = sld [smem:[#allocation6_spill]]  ;;  %s2856_s17 = sld [smem:[#allocation7_spill]] }
 0x56c   : > { %s2857_s13 = smov %s2351_s14  ;;  %23 = sbr.rel (!%p21_p3) target bundleno = 4 (0x4), region = 109 }
 0x56f   : > { %s2858_s14 = smov %s2853_s11 }
 0x573   :  { %1845 = vsyncpa [#allocation3], 1 }
 0x574   :  { %1847 = vsyncpa [#allocation3 + $0x1], 1 }

</bundles_post_ra>
